<compile_context>
chip_gen: v6e
topology: v6e:2x2x1
jax: 0.10.0
libtpu: 0.0.40
codegen_flags: <defaults>
</compile_context>

<pallas_src>
import functools

import jax
import jax.numpy as jnp
from jax import lax
from jax.experimental import pallas as pl
from jax.experimental.pallas import tpu as pltpu


def _attn_kernel(q_ref, k_ref, v_ref, out_ref, attn_ref, *, scale):
    # Blocks: q (HB, TQ, D), k/v (HB, S, D), out (HB, TQ, D), attn (HB, TQ, S).
    # Fold the softmax scale into q (TQ*D multiplies instead of TQ*S).
    q = q_ref[...] * scale
    k = k_ref[...]
    v = v_ref[...]

    # sim = q @ k^T, contracting over D directly (no k transpose / XLU relayout).
    sim = lax.dot_general(
        q, k,
        dimension_numbers=(((2,), (2,)), ((0,), (0,))),
        preferred_element_type=jnp.float32,
    )  # (HB, TQ, S)

    # Numerically-stable softmax over the last axis (matches nn.Softmax(-1)).
    m = jnp.max(sim, axis=-1, keepdims=True)
    e = jnp.exp(sim - m)                              # EUP
    denom = jnp.sum(e, axis=-1, keepdims=True)        # XLU reduce
    # EUP approximate reciprocal + one Newton step -> full f32 accuracy,
    # cheaper than a full-precision divide on the VPU.
    r = pl.reciprocal(denom, approx=True)
    r = r * (2.0 - denom * r)
    p = e * r

    attn_ref[...] = p.astype(attn_ref.dtype)

    # Use the register value (not a VMEM read-back) so the PV matmul push can
    # start without waiting on the attn store.
    out_ref[...] = lax.dot_general(
        p, v,
        dimension_numbers=(((2,), (1,)), ((0,), (0,))),
        preferred_element_type=jnp.float32,
    ).astype(out_ref.dtype)


def _pick_q_tile(S, D, budget_bytes=4 << 20):
    """Largest query tile that divides S, is a multiple of 8, and fits budget."""
    if S % 8 != 0:
        return S  # full-extent dim, no (8,128) constraint
    for tq in (512, 256, 128, 64, 32, 16, 8):
        if tq <= S and S % tq == 0:
            blk = 4 * (2 * tq * D + tq * S)  # q + out + attn blocks (f32)
            if blk <= budget_bytes:
                return tq
    return S


def _pick_head_batch(BH, S, D, TQ, budget_bytes=2 << 20):
    """Batch several heads per grid step when one head's blocks are tiny."""
    if TQ != S:
        return 1
    per_head = 4 * (4 * S * D + S * S)  # q, k, v, out + attn (f32)
    for cand in range(BH, 0, -1):
        if BH % cand == 0 and cand * per_head <= budget_bytes:
            return cand
    return 1


def attn_fn(q, k, v, scale, *, q_tile=None, head_batch=None):
    """Pallas TPU implementation of AttnFn.forward.

    q, k, v: (B, H, S, D). Returns (out, attn) with out: (B, H, S, D),
    attn: (B, H, S, S) — same semantics as the PyTorch module.
    """
    B, H, S, D = q.shape
    BH = B * H
    qf = q.reshape(BH, S, D)
    kf = k.reshape(BH, S, D)
    vf = v.reshape(BH, S, D)

    TQ = q_tile if q_tile is not None else _pick_q_tile(S, D)
    assert S % TQ == 0, "q_tile must divide S"
    HB = head_batch if head_batch is not None else _pick_head_batch(BH, S, D, TQ)
    assert BH % HB == 0, "head_batch must divide B*H"

    n_bh = BH // HB
    n_q = S // TQ

    kernel = functools.partial(_attn_kernel, scale=float(scale))

    # VMEM budget: double-buffered blocks + softmax temporaries, with headroom.
    block_bytes = 4 * HB * (2 * TQ * D + 2 * S * D + TQ * S)
    temp_bytes = 4 * HB * (3 * TQ * S)
    vmem_limit = int(min(max(2 * block_bytes + temp_bytes + (8 << 20), 32 << 20),
                         48 << 20))

    cost = pl.CostEstimate(
        flops=4 * BH * S * S * D,                     # two matmuls
        transcendentals=BH * S * S,                   # exp
        bytes_accessed=4 * BH * (4 * S * D + S * S),  # q,k,v,out + attn traffic
    )

    out_f, attn_f = pl.pallas_call(
        kernel,
        out_shape=(
            jax.ShapeDtypeStruct((BH, S, D), q.dtype),
            jax.ShapeDtypeStruct((BH, S, S), q.dtype),
        ),
        grid_spec=pltpu.PrefetchScalarGridSpec(
            num_scalar_prefetch=0,
            grid=(n_bh, n_q),
            in_specs=[
                pl.BlockSpec((HB, TQ, D), lambda i, j: (i, j, 0)),
                pl.BlockSpec((HB, S, D), lambda i, j: (i, 0, 0)),  # K resident over j
                pl.BlockSpec((HB, S, D), lambda i, j: (i, 0, 0)),  # V resident over j
            ],
            out_specs=[
                pl.BlockSpec((HB, TQ, D), lambda i, j: (i, j, 0)),
                pl.BlockSpec((HB, TQ, S), lambda i, j: (i, j, 0)),
            ],
        ),
        compiler_params=pltpu.CompilerParams(
            dimension_semantics=("parallel", "parallel"),
            vmem_limit_bytes=vmem_limit,
        ),
        cost_estimate=cost,
    )(qf, kf, vf)

    return out_f.reshape(B, H, S, D), attn_f.reshape(B, H, S, S)


def _reference(q, k, v, scale):
    sim = jnp.einsum("bhqd,bhkd->bhqk", q, k)
    attn = jax.nn.softmax(sim * scale, axis=-1)
    out = jnp.einsum("bhqk,bhkd->bhqd", attn, v)
    return out, attn


if __name__ == "__main__":
    key = jax.random.PRNGKey(0)

    # Test 1: module-typical small shape (auto config: head batching, TQ = S).
    B, H, S, D = 2, 2, 8, 32
    scale = D ** -0.5
    kq, kk, kv, key = jax.random.split(key, 4)
    q = jax.random.normal(kq, (B, H, S, D), dtype=jnp.float32)
    k = jax.random.normal(kk, (B, H, S, D), dtype=jnp.float32)
    v = jax.random.normal(kv, (B, H, S, D), dtype=jnp.float32)

    out, attn = attn_fn(q, k, v, scale)
    out = jax.block_until_ready(out)
    attn = jax.block_until_ready(attn)
    ref_out, ref_attn = _reference(q, k, v, scale)
    assert jnp.allclose(out, ref_out, atol=1e-5, rtol=1e-5)
    assert jnp.allclose(attn, ref_attn, atol=1e-5, rtol=1e-5)

    # Test 2: exercise the query-tiled path (TQ < S, K/V resident across q tiles).
    B2, H2, S2, D2 = 1, 2, 32, 32
    scale2 = D2 ** -0.5
    kq2, kk2, kv2, key = jax.random.split(key, 4)
    q2 = jax.random.normal(kq2, (B2, H2, S2, D2), dtype=jnp.float32)
    k2 = jax.random.normal(kk2, (B2, H2, S2, D2), dtype=jnp.float32)
    v2 = jax.random.normal(kv2, (B2, H2, S2, D2), dtype=jnp.float32)

    out2, attn2 = attn_fn(q2, k2, v2, scale2, q_tile=8)
    out2 = jax.block_until_ready(out2)
    attn2 = jax.block_until_ready(attn2)
    ref_out2, ref_attn2 = _reference(q2, k2, v2, scale2)
    assert jnp.allclose(out2, ref_out2, atol=1e-5, rtol=1e-5)
    assert jnp.allclose(attn2, ref_attn2, atol=1e-5, rtol=1e-5)

    print("KERNEL_OK")
</pallas_src>

<mosaic_0001>
module attributes {stable_mosaic.version = 11 : i64} {
  func.func @_attn_kernel(%arg0: i32, %arg1: i32, %arg2: memref<4x8x32xf32, #tpu.memory_space<vmem>>, %arg3: memref<4x8x32xf32, #tpu.memory_space<vmem>>, %arg4: memref<4x8x32xf32, #tpu.memory_space<vmem>>, %arg5: memref<4x8x32xf32, #tpu.memory_space<vmem>>, %arg6: memref<4x8x8xf32, #tpu.memory_space<vmem>>) attributes {dimension_semantics = [#tpu.dimension_semantics<parallel>, #tpu.dimension_semantics<parallel>], iteration_bounds = array<i64: 1, 1>, scalar_prefetch = 0 : i64, scratch_operands = 0 : i64, tpu.core_type = #tpu.core_type<tc>, window_params = [{transform_indices = @transform_0, window_bounds = array<i64: 4, 8, 32>}, {transform_indices = @transform_1, window_bounds = array<i64: 4, 8, 32>}, {transform_indices = @transform_2, window_bounds = array<i64: 4, 8, 32>}, {transform_indices = @transform_3, window_bounds = array<i64: 4, 8, 32>}, {transform_indices = @transform_4, window_bounds = array<i64: 4, 8, 8>}]} {
    %c0 = arith.constant 0 : index
    %c0_0 = arith.constant 0 : index
    %c0_1 = arith.constant 0 : index
    %0 = vector.load %arg2[%c0, %c0_0, %c0_1] : memref<4x8x32xf32, #tpu.memory_space<vmem>>, vector<4x8x32xf32>
    %cst = arith.constant 0.176776692 : f32
    %1 = vector.broadcast %cst : f32 to vector<4x8x32xf32>
    %2 = arith.mulf %0, %1 : vector<4x8x32xf32>
    %c0_2 = arith.constant 0 : index
    %c0_3 = arith.constant 0 : index
    %c0_4 = arith.constant 0 : index
    %3 = vector.load %arg3[%c0_2, %c0_3, %c0_4] : memref<4x8x32xf32, #tpu.memory_space<vmem>>, vector<4x8x32xf32>
    %c0_5 = arith.constant 0 : index
    %c0_6 = arith.constant 0 : index
    %c0_7 = arith.constant 0 : index
    %4 = vector.load %arg4[%c0_5, %c0_6, %c0_7] : memref<4x8x32xf32, #tpu.memory_space<vmem>>, vector<4x8x32xf32>
    %cst_8 = arith.constant dense<0.000000e+00> : vector<4x8x8xf32>
    %5 = tpu.matmul %2, %3, %cst_8 {dimension_numbers = #tpu.dot_dimension_numbers<[2], [2], [1], [1], [0, 0, 0, 1, 1, 1], [0], [0]>} : vector<4x8x32xf32>, vector<4x8x32xf32>, vector<4x8x8xf32> -> vector<4x8x8xf32>
    %cst_9 = arith.constant dense<0xFF800000> : vector<4x8xf32>
    %6 = vector.multi_reduction <maximumf>, %5, %cst_9 [2] : vector<4x8x8xf32> to vector<4x8xf32>
    %7 = vector.shape_cast %6 : vector<4x8xf32> to vector<4x8x1xf32>
    %8 = vector.broadcast %7 : vector<4x8x1xf32> to vector<4x8x8xf32>
    %9 = arith.subf %5, %8 : vector<4x8x8xf32>
    %10 = math.exp %9 : vector<4x8x8xf32>
    %cst_10 = arith.constant dense<0.000000e+00> : vector<4x8xf32>
    %11 = vector.multi_reduction <add>, %10, %cst_10 [2] : vector<4x8x8xf32> to vector<4x8xf32>
    %12 = vector.shape_cast %11 : vector<4x8xf32> to vector<4x8x1xf32>
    %13 = tpu.reciprocal %12 {approx = true} : vector<4x8x1xf32> -> vector<4x8x1xf32>
    %14 = arith.mulf %12, %13 : vector<4x8x1xf32>
    %cst_11 = arith.constant 2.000000e+00 : f32
    %15 = vector.broadcast %cst_11 : f32 to vector<4x8x1xf32>
    %16 = arith.subf %15, %14 : vector<4x8x1xf32>
    %17 = arith.mulf %13, %16 : vector<4x8x1xf32>
    %18 = vector.broadcast %17 : vector<4x8x1xf32> to vector<4x8x8xf32>
    %19 = arith.mulf %10, %18 : vector<4x8x8xf32>
    %c0_12 = arith.constant 0 : index
    %c0_13 = arith.constant 0 : index
    %c0_14 = arith.constant 0 : index
    %20 = vector.load %arg6[%c0_12, %c0_13, %c0_14] : memref<4x8x8xf32, #tpu.memory_space<vmem>>, vector<4x8x8xf32>
    tpu.vector_store %arg6[%c0_12, %c0_13, %c0_14], %19 {strides = array<i32>} : memref<4x8x8xf32, #tpu.memory_space<vmem>>, vector<4x8x8xf32>,
    %cst_15 = arith.constant dense<0.000000e+00> : vector<4x8x32xf32>
    %21 = tpu.matmul %19, %4, %cst_15 {dimension_numbers = #tpu.dot_dimension_numbers<[2], [1], [1], [2], [0, 0, 0, 1, 1, 2], [0], [0]>} : vector<4x8x8xf32>, vector<4x8x32xf32>, vector<4x8x32xf32> -> vector<4x8x32xf32>
    %c0_16 = arith.constant 0 : index
    %c0_17 = arith.constant 0 : index
    %c0_18 = arith.constant 0 : index
    %22 = vector.load %arg5[%c0_16, %c0_17, %c0_18] : memref<4x8x32xf32, #tpu.memory_space<vmem>>, vector<4x8x32xf32>
    tpu.vector_store %arg5[%c0_16, %c0_17, %c0_18], %21 {strides = array<i32>} : memref<4x8x32xf32, #tpu.memory_space<vmem>>, vector<4x8x32xf32>,
    return
  }
  func.func @transform_0(%arg0: i32, %arg1: i32) -> (i32, i32, i32) {
    %c0_i32 = arith.constant 0 : i32
    %c0_i32_0 = arith.constant 0 : i32
    return %arg0, %arg1, %c0_i32 : i32, i32, i32
  }
  func.func @transform_1(%arg0: i32, %arg1: i32) -> (i32, i32, i32) {
    %c0_i32 = arith.constant 0 : i32
    %c0_i32_0 = arith.constant 0 : i32
    %c0_i32_1 = arith.constant 0 : i32
    return %arg0, %c0_i32, %c0_i32_0 : i32, i32, i32
  }
  func.func @transform_2(%arg0: i32, %arg1: i32) -> (i32, i32, i32) {
    %c0_i32 = arith.constant 0 : i32
    %c0_i32_0 = arith.constant 0 : i32
    %c0_i32_1 = arith.constant 0 : i32
    return %arg0, %c0_i32, %c0_i32_0 : i32, i32, i32
  }
  func.func @transform_3(%arg0: i32, %arg1: i32) -> (i32, i32, i32) {
    %c0_i32 = arith.constant 0 : i32
    %c0_i32_0 = arith.constant 0 : i32
    return %arg0, %arg1, %c0_i32 : i32, i32, i32
  }
  func.func @transform_4(%arg0: i32, %arg1: i32) -> (i32, i32, i32) {
    %c0_i32 = arith.constant 0 : i32
    %c0_i32_0 = arith.constant 0 : i32
    return %arg0, %arg1, %c0_i32 : i32, i32, i32
  }
}

</mosaic_0001>

<bundles_post_ra>
// kernel: tpu_custom_call.1
= control target key start
LH: loop header
LB: loop body
LE: loop exit
PB: predicated region body
PF: predicated region fallthrough
CT: control target
= control target key end

     0   :  { %10 = vsyncpa [#allocation3], 0  ;;  %s1088_s0 = inlined_call_operand.hbm [shape: f32[4,8,32], index: 0, kind: input, shape index: {}]   ;;  %s1089_s1 = inlined_call_operand.hbm [shape: f32[4,8,32], index: 1, kind: input, shape index: {}]   ;;  %s1090_s2 = inlined_call_operand.hbm [shape: f32[4,8,32], index: 2, kind: input, shape index: {}]   ;;  %s1091_s3 = inlined_call_operand.hbm [shape: f32[4,8,32], index: 3, kind: output, shape index: {0}]   ;;  %s1092_s4 = inlined_call_operand.hbm [shape: f32[4,8,8], index: 4, kind: output, shape index: {1}]  }
   0x1   :  { %11 = vsyncpa [#allocation6], 0 }
   0x2   :  { %12 = vsyncpa [#allocation4], 0 }
   0x3   :  { %13 = vsyncpa [#allocation10], 0  ;;  %s972_s15 = smov [#allocation5]   ;;  %s973_s17 = smov [#allocation2]  }
   0x4   :  { %s31_s16 = sshll.u32 %s972_s15, 4  ;;  %s19_s18 = sshll.u32 %s973_s17, 4  ;;  %s32_s16 = int_to_ptr.vmem [resolvable:$true] %s31_s16  ;;  %s20_s18 = int_to_ptr.vmem [resolvable:$true] %s19_s18 }
   0x5   :  { %s872_s19 = scalar_lea.vmem %s32_s16, 512  ;;  %p877_p1 = scmp.lt.s32.totalorder %s32_s16, %s32_s16 }
   0x6   :  { %p873_p0 = scmp.ne.s32.totalorder %s32_s16, %s872_s19  ;;  %p878_p2 = scmp.lt.s32.totalorder %s872_s19, %s872_s19 }
   0x8   :  { %p879_p3 = por %p878_p2, %p877_p1 }
   0xa   :  { %p880_p4 = pnand %p879_p3, %p873_p0 }
   0xc   :  { %883 = shalt.err (!%p880_p4)
}
   0xd   :  { %s974_s20 = smov 128   ;;  %s975_s21 = smov 8  }
   0xe   :  { %37 = dma.hbm_to_vmem [thread:$0]  %s1089_s1, 512, %s32_s16, [#allocation6], %s974_s20, %s974_s20, %s975_s21  }
   0xf   :  { %s892_s24 = scalar_lea.vmem %s20_s18, 512  ;;  %p897_p6 = scmp.lt.s32.totalorder %s20_s18, %s20_s18 }
  0x10   :  { %p893_p5 = scmp.ne.s32.totalorder %s20_s18, %s892_s24  ;;  %p898_p7 = scmp.lt.s32.totalorder %s892_s24, %s892_s24 }
  0x12   :  { %p899_p8 = por %p898_p7, %p897_p6 }
  0x14   :  { %p900_p9 = pnand %p899_p8, %p893_p5 }
  0x16   :  { %903 = shalt.err (!%p900_p9)
}
  0x17   :  { %25 = dma.hbm_to_vmem [thread:$0]  %s1088_s0, 512, %s20_s18, [#allocation3], %s974_s20, %s974_s20, %s975_s21  }
  0x18   :  { %s976_s27 = smov [#allocation7]  }
  0x19   :  { %s43_s28 = sshll.u32 %s976_s27, 4  ;;  %s44_s28 = int_to_ptr.vmem [resolvable:$true] %s43_s28 }
  0x1a   :  { %s912_s29 = scalar_lea.vmem %s44_s28, 512  ;;  %p917_p11 = scmp.lt.s32.totalorder %s44_s28, %s44_s28 }
  0x1b   :  { %p913_p10 = scmp.ne.s32.totalorder %s44_s28, %s912_s29  ;;  %p918_p12 = scmp.lt.s32.totalorder %s912_s29, %s912_s29 }
  0x1d   :  { %p919_p13 = por %p918_p12, %p917_p11 }
  0x1f   :  { %p920_p0 = pnand %p919_p13, %p913_p10 }
  0x21   :  { %923 = shalt.err (!%p920_p0)
}
  0x22   :  { %49 = dma.hbm_to_vmem [thread:$0]  %s1090_s2, 512, %s44_s28, [#allocation6], %s974_s20, %s974_s20, %s975_s21  }
  0x23   :  { %964 = dma.done.wait [#allocation3], 512  }
  0x24   :  { %965 = vsyncadd [#allocation3], 4294966784 }
  0x25   :  { %966 = dma.done.wait [#allocation6], 1024  }
  0x26   :  { %967 = vsyncadd [#allocation6], 4294966272  ;;  %v977_v0 = vmov 0.0   ;;  %vm978_vm0 = vmmov 0   ;;  %vm75_vm1 = vcmask 261120   ;;  %v67_v1 = vld [vmem:[#allocation5] sm:$0xff] }
  0x27   :  { %799 = vmatprep.subr.mxu0 %v977_v0  ;;  %801 = vmatprep.mubr.msk.f32.mxu0 %vm978_vm0, %v977_v0  ;;  %v59_v2 = vld [vmem:[#allocation2] sm:$0xff]  ;;  %v68_v3 = vld [vmem:[#allocation5 + $0x8] sm:$0xff]  ;;  %v61_v6 = vld [vmem:[#allocation2 + $0x10] sm:$0xff]  ;;  %vm380_vm2 = vcmask 64512   ;;  %s979_s0 = smov [#allocation9]  }
  0x28   :  { %804 = vmatprep.subr.mxu1 %v977_v0  ;;  %806 = vmatprep.mubr.msk.f32.mxu1 %vm978_vm0, %v977_v0  ;;  %v63_v4 = vmul.f32 0.17677669, %v59_v2  ;;  %v60_v5 = vld [vmem:[#allocation2 + $0x8] sm:$0xff]  ;;  %v69_v7 = vld [vmem:[#allocation5 + $0x10] sm:$0xff]  ;;  %v62_v9 = vld [vmem:[#allocation2 + $0x18] sm:$0xff]  ;;  %s754_s2 = sshll.u32 %s979_s0, 4  ;;  %s755_s2 = int_to_ptr.vmem [resolvable:$true] %s754_s2 }
  0x29   :  { %800 = vmatpush3.xpose.msk.msra.mxu0 %vm75_vm1, %v67_v1  ;;  %805 = vmatpush3.xpose.msk.msra.mxu1 %vm75_vm1, %v68_v3  ;;  %v64_v8 = vmul.f32 0.17677669, %v60_v5  ;;  %v70_v10 = vld [vmem:[#allocation5 + $0x18] sm:$0xff]  ;;  %v65_v11 = vmul.f32 0.17677669, %v61_v6  ;;  %v71_v45 = vld [vmem:[#allocation7] sm:$0xff]  ;;  %p929_p2 = scmp.lt.s32.totalorder %s755_s2, %s755_s2 }
  0x2a   :  { %809 = vmatprep.subr.mxu0 %v977_v0  ;;  %814 = vmatprep.subr.mxu1 %v977_v0  ;;  %v66_v12 = vmul.f32 0.17677669, %v62_v9  ;;  %v72_v46 = vld [vmem:[#allocation7 + $0x8] sm:$0xff]  ;;  %v73_v61 = vld [vmem:[#allocation7 + $0x10] sm:$0xff]  ;;  %v74_v6 = vld [vmem:[#allocation7 + $0x18] sm:$0xff]  ;;  %s924_s5 = scalar_lea.vmem %s755_s2, 512 }
  0x2b   :  { %p925_p1 = scmp.ne.s32.totalorder %s755_s2, %s924_s5  ;;  %p930_p3 = scmp.lt.s32.totalorder %s924_s5, %s924_s5 }
  0x2c   :  { %802 = vmatmul.mubr.msk.f32.vlgmr.msra.gmra.mxu0 %vm75_vm1, %v63_v4  ;;  %807 = vmatmul.mubr.msk.f32.vlgmr.msra.gmra.mxu1 %vm75_vm1, %v64_v8 }
  0x2d   :  { %810 = vmatpush3.xpose.msk.msra.mxu0 %vm75_vm1, %v69_v7  ;;  %811 = vmatprep.mubr.msk.f32.mxu0 %vm978_vm0, %v977_v0  ;;  %p931_p4 = por %p930_p3, %p929_p2 }
  0x2e   :  { %815 = vmatpush3.xpose.msk.msra.mxu1 %vm75_vm1, %v70_v10  ;;  %816 = vmatprep.mubr.msk.f32.mxu1 %vm978_vm0, %v977_v0 }
  0x2f   :  { %819 = vmatprep.subr.mxu0 %v977_v0  ;;  %824 = vmatprep.subr.mxu1 %v977_v0  ;;  %p932_p5 = pnand %p931_p4, %p925_p1 }
  0x30   :  { %812 = vmatmul.mubr.msk.f32.vlgmr.msra.gmra.mxu0 %vm75_vm1, %v65_v11 }
  0x31   :  { %817 = vmatmul.mubr.msk.f32.vlgmr.msra.gmra.mxu1 %vm75_vm1, %v66_v12  ;;  %821 = vmatprep.mubr.msk.f32.mxu0 %vm978_vm0, %v977_v0 }
  0x32   :  { %826 = vmatprep.mubr.msk.f32.mxu1 %vm978_vm0, %v977_v0  ;;  %820 = vmatpush3.msra.mxu0 %v71_v45 }
  0x33   :  { %829 = vmatprep.subr.mxu0 %v977_v0  ;;  %825 = vmatpush3.msra.mxu1 %v72_v46 }
  0x34   :  { %834 = vmatprep.subr.mxu1 %v977_v0 }
  0xec   :  { %v148_v13 = vpop.f32.mrf.mxu0  ;;  %v224_v14 = vpop.f32.mrf.mxu1 }
  0xed   :  { %v381_v15 = vsel %vm380_vm2, %v148_v13, -inf  ;;  %v384_v18 = vsel %vm380_vm2, %v224_v14, -inf }
  0xee   :  { %382 = vmax.xlane.f32.xlu0 %v381_v15  ;;  %v803_v16 = vpop.f32.mrf.mxu0  ;;  %v808_v17 = vpop.f32.mrf.mxu1 }
  0xf0   :  { %v300_v19 = vpop.f32.mrf.mxu0 }
  0xf1   :  { %v387_v20 = vsel %vm380_vm2, %v300_v19, -inf  ;;  %v376_v21 = vpop.f32.mrf.mxu1 }
  0xf2   :  { %385 = vmax.xlane.f32.xlu0 %v384_v18  ;;  %388 = vmax.xlane.f32.xlu1 %v387_v20  ;;  %v813_v22 = vpop.f32.mrf.mxu0  ;;  %v390_v24 = vsel %vm380_vm2, %v376_v21, -inf }
  0xf3   :  { %v818_v23 = vpop.f32.mrf.mxu1 }
  0xf6   :  { %391 = vmax.xlane.f32.xlu1 %v390_v24 }
 0x177   :  { %v383_v25 = vpop.xlane.xlu0 %382 }
 0x178   :  { %v393_v26 = vsub.f32 %v148_v13, %v383_v25 }
 0x17a   :  { %v397_v27 = vmul.f32 1.442695, %v393_v26 }
 0x17b   :  { %v386_v28 = vpop.xlane.xlu0 %385  ;;  %v389_v29 = vpop.xlane.xlu1 %388 }
 0x17c   :  { %848 = vpow2.f32 %v397_v27  ;;  %v394_v30 = vsub.f32 %v224_v14, %v386_v28  ;;  %v395_v31 = vsub.f32 %v300_v19, %v389_v29 }
 0x17e   :  { %v399_v32 = vmul.f32 1.442695, %v394_v30  ;;  %v401_v33 = vmul.f32 1.442695, %v395_v31 }
 0x17f   :  { %v392_v34 = vpop.xlane.xlu1 %391 }
 0x180   :  { %850 = vpow2.f32 %v399_v32  ;;  %v396_v35 = vsub.f32 %v376_v21, %v392_v34 }
 0x181   :  { %852 = vpow2.f32 %v401_v33 }
 0x182   :  { %v403_v36 = vmul.f32 1.442695, %v396_v35 }
 0x184   :  { %854 = vpow2.f32 %v403_v36 }
 0x189   :  { %v849_v37 = vpop.eup %848 }
 0x18a   :  { %v405_v38 = vsel %vm380_vm2, %v849_v37, 0.0 }
 0x18b   :  { %406 = vadd.xlane.f32.xlu0 %v405_v38 }
 0x18d   :  { %v851_v39 = vpop.eup %850 }
 0x18e   :  { %v853_v40 = vpop.eup %852  ;;  %v408_v41 = vsel %vm380_vm2, %v851_v39, 0.0 }
 0x18f   :  { %409 = vadd.xlane.f32.xlu1 %v408_v41  ;;  %v411_v42 = vsel %vm380_vm2, %v853_v40, 0.0 }
 0x190   :  { %412 = vadd.xlane.f32.xlu0 %v411_v42 }
 0x191   :  { %v855_v43 = vpop.eup %854 }
 0x192   :  { %v414_v44 = vsel %vm380_vm2, %v855_v43, 0.0 }
 0x193   :  { %415 = vadd.xlane.f32.xlu1 %v414_v44 }
 0x214   :  { %v407_v47 = vpop.xlane.xlu0 %406 }
 0x215   :  { %856 = vrcp.f32 %v407_v47 }
 0x218   :  { %v410_v48 = vpop.xlane.xlu1 %409 }
 0x219   :  { %v413_v49 = vpop.xlane.xlu0 %412  ;;  %858 = vrcp.f32 %v410_v48 }
 0x21a   :  { %860 = vrcp.f32 %v413_v49 }
 0x21c   :  { %v416_v50 = vpop.xlane.xlu1 %415 }
 0x21d   :  { %862 = vrcp.f32 %v416_v50 }
 0x222   :  { %v857_v51 = vpop.eup %856 }
 0x223   :  { %v421_v52 = vmul.f32 %v857_v51, %v407_v47 }
 0x225   :  { %v425_v53 = vsub.f32 2.0, %v421_v52 }
 0x226   :  { %v859_v54 = vpop.eup %858 }
 0x227   :  { %v861_v55 = vpop.eup %860  ;;  %v429_v56 = vmul.f32 %v857_v51, %v425_v53  ;;  %v422_v57 = vmul.f32 %v859_v54, %v410_v48 }
 0x228   :  { %v423_v58 = vmul.f32 %v861_v55, %v413_v49 }
 0x229   :  { %v433_v59 = vmul.f32 %v849_v37, %v429_v56  ;;  %v426_v60 = vsub.f32 2.0, %v422_v57 }
 0x22a   :  { %v863_v62 = vpop.eup %862  ;;  %v427_v63 = vsub.f32 2.0, %v423_v58 }
 0x22b   :  { %437 = vst.msk [vmem:[#allocation9] sm:$0xff] %vm380_vm2, %v433_v59  ;;  %v430_v1 = vmul.f32 %v859_v54, %v426_v60  ;;  %v424_v2 = vmul.f32 %v863_v62, %v416_v50  ;;  %822 = vmatmul.mubr.msk.f32.vlgmr.msra.gmra.mxu0 %vm380_vm2, %v433_v59 }
 0x22c   :  { %v431_v3 = vmul.f32 %v861_v55, %v427_v63  ;;  %830 = vmatpush3.msra.mxu0 %v73_v61  ;;  %831 = vmatprep.mubr.msk.f32.mxu0 %vm978_vm0, %v977_v0 }
 0x22d   :  { %v434_v4 = vmul.f32 %v851_v39, %v430_v1  ;;  %v428_v5 = vsub.f32 2.0, %v424_v2 }
 0x22e   :  { %v435_v7 = vmul.f32 %v853_v40, %v431_v3 }
 0x22f   :  { %438 = vst.msk [vmem:[#allocation9 + $0x8] sm:$0xff] %vm380_vm2, %v434_v4  ;;  %v432_v8 = vmul.f32 %v863_v62, %v428_v5  ;;  %827 = vmatmul.mubr.msk.f32.vlgmr.msra.gmra.mxu1 %vm380_vm2, %v434_v4 }
 0x230   :  { %439 = vst.msk [vmem:[#allocation9 + $0x10] sm:$0xff] %vm380_vm2, %v435_v7  ;;  %832 = vmatmul.mubr.msk.f32.vlgmr.msra.gmra.mxu0 %vm380_vm2, %v435_v7  ;;  %835 = vmatpush3.msra.mxu1 %v74_v6 }
 0x231   :  { %v436_v9 = vmul.f32 %v855_v43, %v432_v8  ;;  %836 = vmatprep.mubr.msk.f32.mxu1 %vm978_vm0, %v977_v0 }
 0x233   :  { %440 = vst.msk [vmem:[#allocation9 + $0x18] sm:$0xff] %vm380_vm2, %v436_v9  ;;  %837 = vmatmul.mubr.msk.f32.vlgmr.msra.gmra.mxu1 %vm380_vm2, %v436_v9 }
 0x234   :  { %935 = shalt.err (!%p932_p5)
}
 0x235   :  { %760 = dma.vmem_to_hbm [thread:$0]  %s755_s2, 512, %s1092_s4, [#allocation10], %s974_s20, %s974_s20, %s975_s21  }
 0x236   :  { %s980_s8 = smov [#allocation8]  }
 0x237   :  { %s742_s9 = sshll.u32 %s980_s8, 4  ;;  %s743_s9 = int_to_ptr.vmem [resolvable:$true] %s742_s9 }
 0x238   :  { %s944_s4 = scalar_lea.vmem %s743_s9, 512  ;;  %p949_p7 = scmp.lt.s32.totalorder %s743_s9, %s743_s9 }
 0x239   :  { %p945_p6 = scmp.ne.s32.totalorder %s743_s9, %s944_s4  ;;  %p950_p8 = scmp.lt.s32.totalorder %s944_s4, %s944_s4 }
 0x23b   :  { %p951_p9 = por %p950_p8, %p949_p7 }
 0x23d   :  { %p952_p10 = pnand %p951_p9, %p945_p6 }
 0x2eb   :  { %v510_v0 = vpop.f32.mrf.mxu0 }
 0x2ec   :  { %733 = vst.msk [vmem:[#allocation8] sm:$0xff] %vm75_vm1, %v510_v0 }
 0x2ed   :  { %v823_v10 = vpop.f32.mrf.mxu0 }
 0x2ef   :  { %v583_v11 = vpop.f32.mrf.mxu1 }
 0x2f0   :  { %734 = vst.msk [vmem:[#allocation8 + $0x8] sm:$0xff] %vm75_vm1, %v583_v11  ;;  %v656_v12 = vpop.f32.mrf.mxu0 }
 0x2f1   :  { %735 = vst.msk [vmem:[#allocation8 + $0x10] sm:$0xff] %vm75_vm1, %v656_v12  ;;  %v828_v13 = vpop.f32.mrf.mxu1 }
 0x2f2   :  { %v833_v14 = vpop.f32.mrf.mxu0 }
 0x2f3   :  { %v729_v15 = vpop.f32.mrf.mxu1 }
 0x2f4   :  { %736 = vst.msk [vmem:[#allocation8 + $0x18] sm:$0xff] %vm75_vm1, %v729_v15 }
 0x2f5   :  { %v838_v16 = vpop.f32.mrf.mxu1 }
 0x2f6   :  { %955 = shalt.err (!%p952_p10)
}
 0x2f7   :  { %748 = dma.vmem_to_hbm [thread:$0]  %s743_s9, 512, %s1091_s3, [#allocation4], %s974_s20, %s974_s20, %s975_s21  }
 0x2f8   :  { %968 = dma.done.wait [#allocation4], 512  }
 0x2f9   :  { %969 = vsyncadd [#allocation4], 4294966784 }
 0x2fa   :  { %970 = dma.done.wait [#allocation10], 512  }
 0x2fb   :  { %971 = vsyncadd [#allocation10], 4294966784 }
 0x2fc   :  { %767 = vsyncpa [#allocation3], 1 }
 0x2fd   :  { %768 = vsyncpa [#allocation6], 1 }
 0x2fe   :  { %769 = vsyncpa [#allocation4], 1 }
 0x2ff   :  { %770 = vsyncpa [#allocation10], 1 }

</bundles_post_ra>
